<compile_context>
chip_gen: v7x
topology: tpu7x:2x2x1
jax: 0.10.0
libtpu: 0.0.40
codegen_flags: <defaults>
</compile_context>

<pallas_src>
import functools

import jax
import jax.numpy as jnp
import numpy as np
from jax.experimental import pallas as pl
from jax.experimental.pallas import tpu as pltpu


def _act_r_kernel(w_ref, mask_ref, x_ref, out_ref, acc_ref):
    """Processes one (TB, TL) tile of the flattened [B, T*F] input.

    w_ref    : SMEM (2,)     f32  -- b = w[0], d = w[1]
    mask_ref : VMEM (1, TL)  f32  -- 1.0 where the flat column is feature 1
                                     (zero-padded to the grid extent)
    x_ref    : VMEM (TB, TL) f32  -- tile of x.reshape(B, T*F)
    out_ref  : VMEM (TB, 1)  f32  -- recall, written on the last seq tile
    acc_ref  : VMEM (TB, TL) f32  -- running elementwise partial sums
    """
    k = pl.program_id(1)
    nk = pl.num_programs(1)

    @pl.when(k == 0)
    def _init():
        acc_ref[...] = jnp.zeros_like(acc_ref)

    d = w_ref[1]
    xc = jnp.maximum(x_ref[...], jnp.float32(1e-7))   # clamp_min(1e-7)
    powed = jnp.exp(d * jnp.log(xc))                  # xc ** d (xc > 0) -- EUP
    select = mask_ref[...] != jnp.float32(0.0)        # feature==1 AND in-bounds
    acc_ref[...] += jnp.where(select, powed, jnp.float32(0.0))

    @pl.when(k == nk - 1)
    def _epilogue():
        b = w_ref[0]
        s = jnp.sum(acc_ref[...], axis=1, keepdims=True)  # one XLU reduce / tile
        out_ref[...] = jax.nn.sigmoid(b + jnp.log(s))


@functools.partial(jax.jit, static_argnames=("batch_tile", "lane_tile"))
def act_r_forward(x, w, *, batch_tile=256, lane_tile=2048):
    """x: [B, T, F] float32, w: [2] float32 -> [B, 1] float32."""
    x = x.astype(jnp.float32)
    w = w.astype(jnp.float32)
    B, T, F = x.shape
    L = T * F
    xf = x.reshape(B, L)  # trailing-dim merge: free view, fused under jit

    # Tile sizes: multiples of (8, 128) or the full dim (small-shape case).
    TL = L if L <= lane_tile else lane_tile
    TB = B if B <= batch_tile else batch_tile
    grid = (pl.cdiv(B, TB), pl.cdiv(L, TL))  # reduction (seq) axis LAST

    # Compile-time constant column mask selecting feature index 1 of the
    # interleaved layout, zero-padded to the grid extent so partial trailing
    # tiles are masked out with exact zeros inside the kernel.
    L_pad = grid[1] * TL
    cols = np.arange(L_pad)
    mask_np = ((cols % F == 1) & (cols < L)).astype(np.float32).reshape(1, L_pad)
    mask = jnp.asarray(mask_np)

    return pl.pallas_call(
        _act_r_kernel,
        out_shape=jax.ShapeDtypeStruct((B, 1), jnp.float32),
        grid=grid,
        in_specs=[
            pl.BlockSpec(memory_space=pltpu.MemorySpace.SMEM),   # w scalars
            pl.BlockSpec((1, TL), lambda i, k: (0, k)),          # feature mask
            pl.BlockSpec((TB, TL), lambda i, k: (i, k)),         # x tiles
        ],
        out_specs=pl.BlockSpec((TB, 1), lambda i, k: (i, 0)),
        scratch_shapes=[pltpu.VMEM((TB, TL), jnp.float32)],      # accumulator
        compiler_params=pltpu.CompilerParams(
            dimension_semantics=("parallel", "arbitrary"),
            vmem_limit_bytes=32 * 1024 * 1024,
        ),
        cost_estimate=pl.CostEstimate(
            flops=4 * B * L,
            transcendentals=2 * B * L + 3 * B,
            bytes_accessed=4 * B * L + 4 * L_pad + 4 * B + 8,
        ),
    )(w, mask, xf)


def act_r_reference(x, w):
    b, d = w[0], w[1]
    x1 = jnp.maximum(x[:, :, 1], 1e-7)
    s = jnp.sum(jnp.power(x1, d), axis=1)
    return jax.nn.sigmoid(b + jnp.log(s))[:, None]


if __name__ == "__main__":
    # Deterministic parameters, same values as the PyTorch module __init__.
    w = jnp.array([0.17, 0.21], dtype=jnp.float32)

    key = jax.random.PRNGKey(0)
    k1, k2 = jax.random.split(key)

    # Small example matching the module convention: [batch, seq, features].
    x_small = jax.random.uniform(k1, (2, 8, 3), dtype=jnp.float32,
                                 minval=0.0, maxval=5.0)
    out_small = jax.block_until_ready(act_r_forward(x_small, w))
    ref_small = act_r_reference(x_small, w)
    assert out_small.shape == (2, 1), out_small.shape
    assert jnp.allclose(out_small, ref_small, atol=1e-5, rtol=1e-5), (out_small, ref_small)

    # Shape exercising the seq-tile grid, the zero-padded feature mask (partial
    # trailing tile: L = 3000 > 2048) and the persistent accumulator.
    x_big = jax.random.uniform(k2, (8, 1000, 3), dtype=jnp.float32,
                               minval=0.0, maxval=5.0)
    out_big = jax.block_until_ready(act_r_forward(x_big, w))
    ref_big = act_r_reference(x_big, w)
    assert out_big.shape == (8, 1), out_big.shape
    assert jnp.allclose(out_big, ref_big, atol=1e-5, rtol=1e-5), (out_big, ref_big)

    print("KERNEL_OK")
</pallas_src>

<mosaic_0001>
module attributes {stable_mosaic.version = 11 : i64} {
  func.func @_act_r_kernel(%arg0: i32, %arg1: i32, %arg2: memref<2xf32, #tpu.memory_space<smem>>, %arg3: memref<1x24xf32, #tpu.memory_space<vmem>>, %arg4: memref<2x24xf32, #tpu.memory_space<vmem>>, %arg5: memref<2x1xf32, #tpu.memory_space<vmem>>, %arg6: memref<2x24xf32, #tpu.memory_space<vmem>>) attributes {dimension_semantics = [#tpu.dimension_semantics<parallel>, #tpu.dimension_semantics<arbitrary>], iteration_bounds = array<i64: 1, 1>, scalar_prefetch = 0 : i64, scratch_operands = 1 : i64, tpu.core_type = #tpu.core_type<tc>, window_params = [{transform_indices = @transform_0, window_bounds = array<i64: 2>}, {transform_indices = @transform_1, window_bounds = array<i64: 1, 24>}, {transform_indices = @transform_2, window_bounds = array<i64: 2, 24>}, {transform_indices = @transform_3, window_bounds = array<i64: 2, 1>}]} {
    %c0_i32 = arith.constant 0 : i32
    %0 = arith.cmpi eq, %arg1, %c0_i32 : i32
    %1 = arith.extui %0 : i1 to i32
    %c0_i32_0 = arith.constant 0 : i32
    %2 = arith.cmpi ne, %1, %c0_i32_0 : i32
    scf.if %2 {
      %cst_12 = arith.constant 0.000000e+00 : f32
      %24 = vector.broadcast %cst_12 : f32 to vector<2x24xf32>
      %c0_13 = arith.constant 0 : index
      %c0_14 = arith.constant 0 : index
      %25 = vector.load %arg6[%c0_13, %c0_14] : memref<2x24xf32, #tpu.memory_space<vmem>>, vector<2x24xf32>
      tpu.vector_store %arg6[%c0_13, %c0_14], %24 {strides = array<i32>} : memref<2x24xf32, #tpu.memory_space<vmem>>, vector<2x24xf32>,
    } else {
    }
    %c1 = arith.constant 1 : index
    %3 = memref.load %arg2[%c1] : memref<2xf32, #tpu.memory_space<smem>>
    %c0 = arith.constant 0 : index
    %c0_1 = arith.constant 0 : index
    %4 = vector.load %arg4[%c0, %c0_1] : memref<2x24xf32, #tpu.memory_space<vmem>>, vector<2x24xf32>
    %cst = arith.constant 1.000000e-07 : f32
    %5 = vector.broadcast %cst : f32 to vector<2x24xf32>
    %6 = arith.maximumf %4, %5 : vector<2x24xf32>
    %7 = math.log %6 : vector<2x24xf32>
    %8 = vector.broadcast %3 : f32 to vector<2x24xf32>
    %9 = arith.mulf %8, %7 : vector<2x24xf32>
    %10 = math.exp %9 : vector<2x24xf32>
    %c0_2 = arith.constant 0 : index
    %c0_3 = arith.constant 0 : index
    %11 = vector.load %arg3[%c0_2, %c0_3] : memref<1x24xf32, #tpu.memory_space<vmem>>, vector<1x24xf32>
    %cst_4 = arith.constant 0.000000e+00 : f32
    %12 = vector.broadcast %cst_4 : f32 to vector<1x24xf32>
    %13 = arith.cmpf one, %11, %12 : vector<1x24xf32>
    %c0_5 = arith.constant 0 : index
    %c0_6 = arith.constant 0 : index
    %14 = vector.load %arg6[%c0_5, %c0_6] : memref<2x24xf32, #tpu.memory_space<vmem>>, vector<2x24xf32>
    %cst_7 = arith.constant 0.000000e+00 : f32
    %15 = vector.shape_cast %13 : vector<1x24xi1> to vector<1x24xi1>
    %16 = vector.broadcast %15 : vector<1x24xi1> to vector<2x24xi1>
    %17 = vector.broadcast %cst_7 : f32 to vector<2x24xf32>
    %18 = arith.select %16, %10, %17 : vector<2x24xi1>, vector<2x24xf32>
    %19 = arith.addf %14, %18 : vector<2x24xf32>
    %c0_8 = arith.constant 0 : index
    %c0_9 = arith.constant 0 : index
    %20 = vector.load %arg6[%c0_8, %c0_9] : memref<2x24xf32, #tpu.memory_space<vmem>>, vector<2x24xf32>
    tpu.vector_store %arg6[%c0_8, %c0_9], %19 {strides = array<i32>} : memref<2x24xf32, #tpu.memory_space<vmem>>, vector<2x24xf32>,
    %c0_i32_10 = arith.constant 0 : i32
    %21 = arith.cmpi eq, %arg1, %c0_i32_10 : i32
    %22 = arith.extui %21 : i1 to i32
    %c0_i32_11 = arith.constant 0 : i32
    %23 = arith.cmpi ne, %22, %c0_i32_11 : i32
    scf.if %23 {
      %c0_12 = arith.constant 0 : index
      %24 = memref.load %arg2[%c0_12] : memref<2xf32, #tpu.memory_space<smem>>
      %c0_13 = arith.constant 0 : index
      %c0_14 = arith.constant 0 : index
      %25 = vector.load %arg6[%c0_13, %c0_14] : memref<2x24xf32, #tpu.memory_space<vmem>>, vector<2x24xf32>
      %cst_15 = arith.constant dense<0.000000e+00> : vector<2xf32>
      %26 = vector.multi_reduction <add>, %25, %cst_15 [1] : vector<2x24xf32> to vector<2xf32>
      %27 = vector.shape_cast %26 : vector<2xf32> to vector<2x1xf32>
      %28 = math.log %27 : vector<2x1xf32>
      %29 = vector.broadcast %24 : f32 to vector<2x1xf32>
      %30 = arith.addf %29, %28 : vector<2x1xf32>
      %31 = arith.negf %30 : vector<2x1xf32>
      %32 = math.exp %31 : vector<2x1xf32>
      %cst_16 = arith.constant 1.000000e+00 : f32
      %33 = vector.broadcast %cst_16 : f32 to vector<2x1xf32>
      %34 = arith.addf %33, %32 : vector<2x1xf32>
      %35 = arith.divf %33, %34 : vector<2x1xf32>
      %c0_17 = arith.constant 0 : index
      %c0_18 = arith.constant 0 : index
      %36 = vector.load %arg5[%c0_17, %c0_18] : memref<2x1xf32, #tpu.memory_space<vmem>>, vector<2x1xf32>
      tpu.vector_store %arg5[%c0_17, %c0_18], %35 {strides = array<i32>} : memref<2x1xf32, #tpu.memory_space<vmem>>, vector<2x1xf32>,
    } else {
    }
    return
  }
  func.func @transform_0(%arg0: i32, %arg1: i32) -> i32 {
    %c0_i32 = arith.constant 0 : i32
    %c0_i32_0 = arith.constant 0 : i32
    return %c0_i32 : i32
  }
  func.func @transform_1(%arg0: i32, %arg1: i32) -> (i32, i32) {
    %c0_i32 = arith.constant 0 : i32
    %c0_i32_0 = arith.constant 0 : i32
    return %c0_i32, %arg1 : i32, i32
  }
  func.func @transform_2(%arg0: i32, %arg1: i32) -> (i32, i32) {
    %c0_i32 = arith.constant 0 : i32
    return %arg0, %arg1 : i32, i32
  }
  func.func @transform_3(%arg0: i32, %arg1: i32) -> (i32, i32) {
    %c0_i32 = arith.constant 0 : i32
    %c0_i32_0 = arith.constant 0 : i32
    return %arg0, %c0_i32 : i32, i32
  }
}

</mosaic_0001>

<bundles_post_ra>
// kernel: act_r_forward.1
= control target key start
LH: loop header
LB: loop body
LE: loop exit
PB: predicated region body
PF: predicated region fallthrough
CT: control target
= control target key end

     0   :  { %8 = vsyncpa [#allocation4], 0  ;;  %s147_s0 = inlined_call_operand.vmem [shape: f32[2], index: 0, kind: input, shape index: {}]   ;;  %s148_s1 = inlined_call_operand.vmem [shape: f32[1,24], index: 1, kind: input, shape index: {}]   ;;  %s149_s2 = inlined_call_operand.vmem [shape: f32[2,24], index: 2, kind: input, shape index: {}]   ;;  %s150_s3 = inlined_call_operand.vmem [shape: f32[2,1], index: 3, kind: output, shape index: {}]  }
   0x1   :  { %s15_s14 = sshll.u32 %s147_s0, 4  ;;  %s16_s14 = int_to_ptr.vmem [resolvable:$true] %s15_s14 }
   0x2   :  { %s95_s15 = scalar_lea.vmem %s16_s14, 16  ;;  %p100_p1 = scmp.lt.s32.totalorder %s16_s14, %s16_s14 }
   0x3   :  { %p96_p0 = scmp.ne.s32.totalorder %s16_s14, %s95_s15  ;;  %p101_p2 = scmp.lt.s32.totalorder %s95_s15, %s95_s15 }
   0x5   :  { %p102_p3 = por %p101_p2, %p100_p1 }
   0x7   :  { %p103_p4 = pnand %p102_p3, %p96_p0 }
   0x9   :  { %106 = shalt.err (!%p103_p4)
}
   0xa   :  { %s109_s16 = smov [#allocation3]  }
   0xb   :  { %18 = dma.vmem_to_smem %s16_s14, 16, %s109_s16, [#allocation4]  }
   0xc   :  { %107 = dma.done.wait [#allocation4], 16  }
   0xd   :  { %108 = vsyncadd [#allocation4], 4294967280 }
   0xe   :  { %26 = sfence }
   0xf   :  { %vm31_vm0 = vcmask 189440   ;;  %v34_v0 = vld [vmem:[%s149_s2] sm:$0x3]  ;;  %v110_v1 = vmov 0.0   ;;  %s80_s0 = sld [smem:[#allocation3 + $0x1]]  ;;  %v46_v3 = vlaneseq  ;;  %v111_v12 = vmov 0  }
  0x10   :  { %32 = vst.msk [vmem:[#allocation2] sm:$0x3] %vm31_vm0, %v110_v1  ;;  %v35_v2 = vmax.f32 %v34_v0, 1e-07  ;;  %v42_v7 = vld [vmem:[%s148_s1] sm:$0x1] }
  0x11   :  { %v47_v9 = vshrl.u32 %v46_v3, 7  ;;  %vm43_vm1 = vcmp.ne.f32.partialorder %v42_v7, 0.0  ;;  %s58_s1 = sld [smem:[#allocation3]]  ;;  %vm73_vm3 = vcmask 1024  }
  0x12   :  { %85 = vlog2.f32 %v35_v2  ;;  %v45_v13 = vsel %vm43_vm1, 1, %v111_v12 }
  0x13   :  { %v48_v11 = vsub.s32 0, %v47_v9 }
  0x15   :  { %v38_v5 = vstv %s80_s0  ;;  %v49_v14 = vrot.slane %v45_v13, %v48_v11 }
  0x17   :  { %vm50_vm2 = vcmp.eq.s32.totalorder %v49_v14, 1  ;;  %v44_v15 = vld [vmem:[#allocation2] sm:$0x3]  ;;  %v65_v23 = vstv %s58_s1 }
  0x1c   :  { %v86_v4 = vpop.eup %85 }
  0x1d   :  { %v37_v6 = vmul.f32 0.6931472, %v86_v4 }
  0x1f   :  { %v39_v8 = vmul.f32 %v38_v5, %v37_v6 }
  0x21   :  { %v40_v10 = vmul.f32 1.442695, %v39_v8 }
  0x23   :  { %87 = vpow2.f32 %v40_v10 }
  0x2d   :  { %v88_v16 = vpop.eup %87 }
  0x2e   :  { %v51_v17 = vsel %vm50_vm2, %v88_v16, 0.0 }
  0x2f   :  { %v52_v18 = vadd.f32 %v51_v17, %v44_v15 }
  0x31   :  { %54 = vst.msk [vmem:[#allocation2] sm:$0x3] %vm31_vm0, %v52_v18 }
  0x38   :  { %v59_v19 = vld [vmem:[#allocation2] sm:$0x3] }
  0x39   :  { %v60_v20 = vsel %vm31_vm0, %v59_v19, 0.0 }
  0x3a   :  { %61 = vadd.xlane.f32.xlu0 %v60_v20 }
  0xc7   :  { %v62_v21 = vpop.xlane.xlu0 %61 }
  0xc8   :  { %89 = vlog2.f32 %v62_v21 }
  0xd2   :  { %v90_v22 = vpop.eup %89 }
  0xd3   :  { %v64_v24 = vmul.f32 0.6931472, %v90_v22 }
  0xd5   :  { %v66_v25 = vadd.f32 %v65_v23, %v64_v24 }
  0xd7   :  { %v81_v26 = vmul.f32 -1.442695, %v66_v25 }
  0xd9   :  { %91 = vpow2.f32 %v81_v26 }
  0xe3   :  { %v92_v27 = vpop.eup %91 }
  0xe4   :  { %v70_v28 = vadd.f32 1.0, %v92_v27 }
  0xe6   :  { %93 = vrcp.f32 %v70_v28 }
  0xf0   :  { %v94_v29 = vpop.eup %93 }
  0xf1   :  { %74 = vst.msk [vmem:[%s150_s3] sm:$0x3] %vm73_vm3, %v94_v29 }
  0xf2   :  { %79 = vsyncpa [#allocation4], 1 }

</bundles_post_ra>
